<compile_context>
chip_gen: v5e
topology: v5e:2x2
jax: 0.10.0
libtpu: 0.0.40
codegen_flags: <defaults>
</compile_context>

<pallas_src>
import functools

import jax
import jax.numpy as jnp
from jax.experimental import pallas as pl
from jax.experimental.pallas import tpu as pltpu


def _round_up(a, b):
    return (a + b - 1) // b * b


def patch_embed_kernel(patches_ref, w_ref, pos_ref, o_ref):
    # patches_ref: (bb, tile_p, K_pad) bf16 -- bb batch images per step
    # w_ref:       (K_pad, N_pad)      bf16 -- grid-invariant (DMA'd once)
    # pos_ref:     (tile_p, N_pad)     f32  -- pos_embed + conv bias, batch-invariant
    # o_ref:       (bb, tile_p, N_pad) out dtype
    acc = jnp.einsum(
        "bpk,kn->bpn",
        patches_ref[...],
        w_ref[...],
        preferred_element_type=jnp.float32,
    )
    o_ref[...] = (acc + pos_ref[...][None, :, :]).astype(o_ref.dtype)


@functools.partial(jax.jit, static_argnames=("patch_size",))
def _patch_embedding_impl(x, conv_w, conv_b, pos_embed, patch_size):
    B, C, H, W = x.shape
    p = patch_size
    gh, gw = H // p, W // p
    num_patches = gh * gw
    embed_dim = conv_w.shape[0]
    patch_dim = C * p * p
    out_dtype = x.dtype

    # ---- lane/sublane-dense padded sizes & tile choice ----
    K_pad = _round_up(patch_dim, 128)
    N_pad = _round_up(embed_dim, 128)

    P16 = _round_up(num_patches, 16)          # bf16: 2 rows / sublane -> mult of 16
    if P16 <= 512:
        tile_p = P16
    else:
        best = None
        for cand in range(512, 255, -16):     # tile in [256, 512], minimize padding
            pad = _round_up(P16, cand) - P16
            if best is None or pad < best[1]:
                best = (cand, pad)
        tile_p = best[0]
    P_pad = _round_up(P16, tile_p)
    p_tiles = P_pad // tile_p

    # Fold several batch images into each step (~512 rows / step), bb | B.
    bb = 1
    for cand in range(min(B, max(1, 512 // tile_p)), 0, -1):
        if B % cand == 0:
            bb = cand
            break
    b_tiles = B // bb

    # ---- glue (XLA): patchify, weight reshape, bias fold, bf16 cast, pad ----
    patches = x.reshape(B, C, gh, p, gw, p)
    patches = jnp.transpose(patches, (0, 2, 4, 1, 3, 5))     # (B, gh, gw, C, p, p)
    patches = patches.reshape(B, num_patches, patch_dim).astype(jnp.bfloat16)
    patches = jnp.pad(
        patches, ((0, 0), (0, P_pad - num_patches), (0, K_pad - patch_dim)))

    w_mat = conv_w.reshape(embed_dim, patch_dim).T.astype(jnp.bfloat16)
    w_mat = jnp.pad(w_mat, ((0, K_pad - patch_dim), (0, N_pad - embed_dim)))

    pos_plus_b = (pos_embed.reshape(num_patches, embed_dim).astype(jnp.float32)
                  + conv_b.reshape(1, embed_dim).astype(jnp.float32))
    pos_plus_b = jnp.pad(
        pos_plus_b, ((0, P_pad - num_patches), (0, N_pad - embed_dim)))

    # ---- grid / specs ----
    if p_tiles == 1:
        # Only one patch tile: let batch lead (never a size-1 leading parallel axis).
        grid = (b_tiles,)
        patches_map = lambda b: (b, 0, 0)
        w_map = lambda b: (0, 0)
        pos_map = lambda b: (0, 0)
        out_map = lambda b: (b, 0, 0)
        dims = ("parallel",)
    else:
        # Batch iterates fastest -> pos tile stays VMEM-resident across batches.
        grid = (p_tiles, b_tiles)
        patches_map = lambda i, b: (b, i, 0)
        w_map = lambda i, b: (0, 0)
        pos_map = lambda i, b: (i, 0)
        out_map = lambda i, b: (b, i, 0)
        dims = ("parallel", "parallel")

    # VMEM budget from the actual double-buffered footprint (one config fits
    # v5e/v6e/v7x; v7x physical VMEM is 64 MiB).
    out_isz = jnp.dtype(out_dtype).itemsize
    vmem_bytes = 2 * (bb * tile_p * K_pad * 2          # patches (bf16)
                      + bb * tile_p * N_pad * out_isz  # output
                      + tile_p * N_pad * 4             # pos (f32)
                      + K_pad * N_pad * 2)             # weight (bf16)
    vmem_limit = int(min(max(vmem_bytes + (4 << 20), 16 << 20), 32 << 20))

    out = pl.pallas_call(
        patch_embed_kernel,
        out_shape=jax.ShapeDtypeStruct((B, P_pad, N_pad), out_dtype),
        grid=grid,
        in_specs=[
            pl.BlockSpec((bb, tile_p, K_pad), patches_map),
            pl.BlockSpec((K_pad, N_pad), w_map),
            pl.BlockSpec((tile_p, N_pad), pos_map),
        ],
        out_specs=pl.BlockSpec((bb, tile_p, N_pad), out_map),
        compiler_params=pltpu.CompilerParams(
            dimension_semantics=dims,
            vmem_limit_bytes=vmem_limit,
        ),
    )(patches, w_mat, pos_plus_b)

    # No-op views when embed_dim / num_patches are already padded sizes.
    return out[:, :num_patches, :embed_dim]


def patch_embedding(x, conv_w, conv_b, pos_embed, patch_size):
    """x: (B, C, H, W) NCHW.
    conv_w: (embed_dim, C, p, p)  (PyTorch Conv2d layout)
    conv_b: (embed_dim,)
    pos_embed: (1, num_patches, embed_dim)
    Returns ((B, num_patches, embed_dim), grid_size)."""
    gh = x.shape[2] // patch_size
    gw = x.shape[3] // patch_size
    out = _patch_embedding_impl(x, conv_w, conv_b, pos_embed, patch_size)
    return out, (gh, gw)


if __name__ == "__main__":
    # Small shapes consistent with the module: img 16x16, patch 4, C=4, D=32.
    B, C, H, W = 2, 4, 16, 16
    patch_size = 4
    embed_dim = 32
    gh, gw = H // patch_size, W // patch_size
    num_patches = gh * gw
    patch_dim = C * patch_size * patch_size

    key = jax.random.PRNGKey(0)
    kx, kw, kb, kp = jax.random.split(key, 4)

    x = jax.random.normal(kx, (B, C, H, W), dtype=jnp.float32)
    conv_w = jax.random.normal(kw, (embed_dim, C, patch_size, patch_size),
                               dtype=jnp.float32) * 0.02
    conv_b = jax.random.normal(kb, (embed_dim,), dtype=jnp.float32) * 0.02
    pos_embed = jax.random.normal(kp, (1, num_patches, embed_dim),
                                  dtype=jnp.float32)

    out, grid_size = patch_embedding(x, conv_w, conv_b, pos_embed, patch_size)
    out = jax.block_until_ready(out)

    # Pure-JAX f32 reference (strided conv as matmul on extracted patches).
    # Kernel uses bf16 MXU operands with f32 accumulation -> loosened tolerance.
    patches_ref = x.reshape(B, C, gh, patch_size, gw, patch_size)
    patches_ref = jnp.transpose(patches_ref, (0, 2, 4, 1, 3, 5)).reshape(
        B, num_patches, patch_dim)
    ref = patches_ref @ conv_w.reshape(embed_dim, patch_dim).T + conv_b
    ref = ref + pos_embed

    assert out.shape == (B, num_patches, embed_dim), out.shape
    assert grid_size == (gh, gw)
    max_err = float(jnp.max(jnp.abs(out.astype(jnp.float32) - ref)))
    assert jnp.allclose(out.astype(jnp.float32), ref, atol=2e-2, rtol=2e-2), max_err

    print("KERNEL_OK")
</pallas_src>

<mosaic_0001>
module attributes {stable_mosaic.version = 11 : i64} {
  func.func @patch_embed_kernel(%arg0: i32, %arg1: memref<2x16x128xbf16, #tpu.memory_space<vmem>>, %arg2: memref<128x128xbf16, #tpu.memory_space<vmem>>, %arg3: memref<16x128xf32, #tpu.memory_space<vmem>>, %arg4: memref<2x16x128xf32, #tpu.memory_space<vmem>>) attributes {dimension_semantics = [#tpu.dimension_semantics<parallel>], iteration_bounds = array<i64: 1>, scalar_prefetch = 0 : i64, scratch_operands = 0 : i64, tpu.core_type = #tpu.core_type<tc>, window_params = [{transform_indices = @transform_0, window_bounds = array<i64: 2, 16, 128>}, {pipeline_mode = #tpu.pipeline_mode<synchronous>, transform_indices = @transform_1, window_bounds = array<i64: 128, 128>}, {pipeline_mode = #tpu.pipeline_mode<synchronous>, transform_indices = @transform_2, window_bounds = array<i64: 16, 128>}, {transform_indices = @transform_3, window_bounds = array<i64: 2, 16, 128>}]} {
    %c0 = arith.constant 0 : index
    %c0_0 = arith.constant 0 : index
    %c0_1 = arith.constant 0 : index
    %0 = vector.load %arg1[%c0, %c0_0, %c0_1] : memref<2x16x128xbf16, #tpu.memory_space<vmem>>, vector<2x16x128xbf16>
    %c0_2 = arith.constant 0 : index
    %c0_3 = arith.constant 0 : index
    %1 = vector.load %arg2[%c0_2, %c0_3] : memref<128x128xbf16, #tpu.memory_space<vmem>>, vector<128x128xbf16>
    "tpu.trace_start"() <{level = 10 : i32, message = "bpk,kn->bpn"}> : () -> ()
    %cst = arith.constant dense<0.000000e+00> : vector<2x16x128xf32>
    %2 = tpu.matmul %0, %1, %cst {dimension_numbers = #tpu.dot_dimension_numbers<[2], [0], [0, 1], [1], [0, 0, 0, 1, 1, 1], [], []>} : vector<2x16x128xbf16>, vector<128x128xbf16>, vector<2x16x128xf32> -> vector<2x16x128xf32>
    "tpu.trace_stop"() : () -> ()
    %c0_4 = arith.constant 0 : index
    %c0_5 = arith.constant 0 : index
    %3 = vector.load %arg3[%c0_4, %c0_5] : memref<16x128xf32, #tpu.memory_space<vmem>>, vector<16x128xf32>
    %4 = vector.shape_cast %3 : vector<16x128xf32> to vector<1x16x128xf32>
    %5 = vector.broadcast %4 : vector<1x16x128xf32> to vector<2x16x128xf32>
    %6 = arith.addf %2, %5 : vector<2x16x128xf32>
    %c0_6 = arith.constant 0 : index
    %c0_7 = arith.constant 0 : index
    %c0_8 = arith.constant 0 : index
    %7 = vector.load %arg4[%c0_6, %c0_7, %c0_8] : memref<2x16x128xf32, #tpu.memory_space<vmem>>, vector<2x16x128xf32>
    tpu.vector_store %arg4[%c0_6, %c0_7, %c0_8], %6 {strides = array<i32>} : memref<2x16x128xf32, #tpu.memory_space<vmem>>, vector<2x16x128xf32>,
    return
  }
  func.func @transform_0(%arg0: i32) -> (i32, i32, i32) {
    %c0_i32 = arith.constant 0 : i32
    %c0_i32_0 = arith.constant 0 : i32
    %c0_i32_1 = arith.constant 0 : i32
    return %arg0, %c0_i32, %c0_i32_0 : i32, i32, i32
  }
  func.func @transform_1(%arg0: i32) -> (i32, i32) {
    %c0_i32 = arith.constant 0 : i32
    %c0_i32_0 = arith.constant 0 : i32
    %c0_i32_1 = arith.constant 0 : i32
    return %c0_i32, %c0_i32_0 : i32, i32
  }
  func.func @transform_2(%arg0: i32) -> (i32, i32) {
    %c0_i32 = arith.constant 0 : i32
    %c0_i32_0 = arith.constant 0 : i32
    %c0_i32_1 = arith.constant 0 : i32
    return %c0_i32, %c0_i32_0 : i32, i32
  }
  func.func @transform_3(%arg0: i32) -> (i32, i32, i32) {
    %c0_i32 = arith.constant 0 : i32
    %c0_i32_0 = arith.constant 0 : i32
    %c0_i32_1 = arith.constant 0 : i32
    return %arg0, %c0_i32, %c0_i32_0 : i32, i32, i32
  }
}

</mosaic_0001>

<bundles_post_ra>
// kernel: _patch_embedding_impl.1
= control target key start
LH: loop header
LB: loop body
LE: loop exit
PB: predicated region body
PF: predicated region fallthrough
CT: control target
= control target key end

     0   :  { %s287_s0 = inlined_call_operand.vmem [shape: bf16[2,16,128], index: 0, kind: input, shape index: {}]   ;;  %s288_s1 = inlined_call_operand.vmem [shape: bf16[128,128], index: 1, kind: input, shape index: {}]   ;;  %s289_s2 = inlined_call_operand.vmem [shape: f32[16,128], index: 2, kind: input, shape index: {}]   ;;  %s290_s3 = inlined_call_operand.hbm [shape: f32[2,16,128], index: 3, kind: output, shape index: {}]  }
   0x1   :  { %v187_v0 = vld [vmem:[%s288_s1 + $0x38] sm:$0xff]  ;;  %v186_v1 = vld [vmem:[%s288_s1 + $0x30] sm:$0xff] }
   0x2   :  { %97 = vmatpush.bf16.msra.mxu0 %v187_v0  ;;  %188 = vmatpush.bf16.msra.mxu1 %v187_v0 }
   0x3   :  { %8 = vsyncpa [#allocation3], 0  ;;  %v185_v2 = vld [vmem:[%s288_s1 + $0x28] sm:$0xff]  ;;  %v184_v3 = vld [vmem:[%s288_s1 + $0x20] sm:$0xff]  ;;  %s225_s8 = smov [#allocation2]   ;;  %s126_s11 = sshll.u32 %s290_s3, 4  ;;  %s127_s11 = int_to_ptr.hbm [resolvable:$true] %s126_s11 }
   0x4   :  { %v183_v4 = vld [vmem:[%s288_s1 + $0x18] sm:$0xff]  ;;  %v182_v5 = vld [vmem:[%s288_s1 + $0x10] sm:$0xff]  ;;  %v181_v6 = vld [vmem:[%s288_s1 + $0x8] sm:$0xff]  ;;  %s226_s12 = smov 128   ;;  %s227_s13 = smov 8  }
   0x5   :  { %v180_v7 = vld [vmem:[%s288_s1] sm:$0xff]  ;;  %v179_v9 = vld [vmem:[%s287_s0 + $0x8] sm:$0xff] }
   0x6   :  { %98 = vmatpush.bf16.msra.mxu0 %v186_v1  ;;  %189 = vmatpush.bf16.msra.mxu1 %v186_v1  ;;  %v178_v8 = vld [vmem:[%s287_s0] sm:$0xff]  ;;  %v36_v15 = vld [vmem:[%s289_s2 + $0x8] sm:$0xff]  ;;  %s124_s0 = sshll.u32 %s225_s8, 4  ;;  %s125_s0 = int_to_ptr.vmem [resolvable:$true] %s124_s0 }
   0x7   :  { %v35_v10 = vld [vmem:[%s289_s2] sm:$0xff] }
   0xa   :  { %99 = vmatpush.bf16.msra.mxu0 %v185_v2  ;;  %190 = vmatpush.bf16.msra.mxu1 %v185_v2 }
   0xe   :  { %100 = vmatpush.bf16.msra.mxu0 %v184_v3  ;;  %191 = vmatpush.bf16.msra.mxu1 %v184_v3 }
  0x12   :  { %101 = vmatpush.bf16.msra.mxu0 %v183_v4  ;;  %192 = vmatpush.bf16.msra.mxu1 %v183_v4 }
  0x16   :  { %102 = vmatpush.bf16.msra.mxu0 %v182_v5  ;;  %193 = vmatpush.bf16.msra.mxu1 %v182_v5 }
  0x1a   :  { %103 = vmatpush.bf16.msra.mxu0 %v181_v6  ;;  %194 = vmatpush.bf16.msra.mxu1 %v181_v6 }
  0x1e   :  { %104 = vmatpush.bf16.msra.mxu0 %v180_v7  ;;  %195 = vmatpush.bf16.msra.mxu1 %v180_v7 }
  0x21   :  { %105 = vmatmul.bf16.vlgmr.msra.gmra.mxu0 %v178_v8  ;;  %110 = vmatmul.bf16.vlgmr.msra.gmra.mxu1 %v179_v9 }
  0x9e   :  { %v106_v11 = vpop.f32.mrf.mxu0  ;;  %v111_v12 = vpop.f32.mrf.mxu1 }
  0x9f   :  { %v107_v13 = vadd.f32 %v106_v11, %v35_v10  ;;  %v112_v14 = vadd.f32 %v111_v12, %v35_v10 }
  0xa1   :  { %116 = vst [vmem:[#allocation2] sm:$0xff] %v107_v13 }
  0xa2   :  { %118 = vst [vmem:[#allocation2 + $0x10] sm:$0xff] %v112_v14 }
  0xa6   :  { %v108_v16 = vpop.f32.mrf.mxu0  ;;  %v113_v17 = vpop.f32.mrf.mxu1 }
  0xa7   :  { %v109_v18 = vadd.f32 %v108_v16, %v36_v15  ;;  %v114_v19 = vadd.f32 %v113_v17, %v36_v15 }
  0xa9   :  { %117 = vst [vmem:[#allocation2 + $0x8] sm:$0xff] %v109_v18 }
  0xaa   :  { %119 = vst [vmem:[#allocation2 + $0x18] sm:$0xff] %v114_v19 }
  0xab   :  { %132 = dma.vmem_to_hbm [thread:$0]  %s125_s0, 512, %s127_s11, [#allocation3], %s226_s12, %s226_s12, %s227_s13  }
  0xac   :  { %223 = dma.done.wait [#allocation3], 512  }
  0xad   :  { %224 = vsyncadd [#allocation3], 4294966784 }
  0xae   :  { %137 = vsyncpa [#allocation3], 1 }

</bundles_post_ra>
